<compile_context>
chip_gen: v5e
topology: v5e:2x2
jax: 0.10.0
libtpu: 0.0.40
codegen_flags: <defaults>
</compile_context>

<pallas_src>
import functools

import jax
import jax.numpy as jnp
from jax.experimental import pallas as pl
from jax.experimental.pallas import tpu as pltpu


def _gap2d_kernel(x_ref, o_ref, acc_ref, *, inv_hw):
    # x_ref: (TN, TC, THW) block in VMEM; o_ref: (TN, TC); acc_ref: f32 (TN, TC).
    k = pl.program_id(2)

    @pl.when(k == 0)
    def _init():
        acc_ref[...] = jnp.zeros_like(acc_ref)

    # Lane-dense spatial reduction, accumulated in f32.
    x = x_ref[...].astype(jnp.float32)
    acc_ref[...] += jnp.sum(x, axis=-1)

    @pl.when(k == pl.num_programs(2) - 1)
    def _finalize():
        o_ref[...] = (acc_ref[...] * inv_hw).astype(o_ref.dtype)


def _pick_tile(total, multiple, max_tile):
    """Largest divisor of `total` that is a multiple of `multiple` and <= max_tile.

    Returns None if no such divisor exists.
    """
    best = None
    d = multiple
    limit = min(total, max_tile)
    while d <= limit:
        if total % d == 0:
            best = d
        d += multiple
    return best


def global_average_pooling_2d(x, *, block_bytes=2 * 1024 * 1024):
    """x: (N, C, H, W) -> (N, C), mean over H and W (matches torch.mean(dim=[2,3]))."""
    N, C, H, W = x.shape
    HW = H * W
    itemsize = jnp.dtype(x.dtype).itemsize

    # Flatten spatial dims so the last (lane) dim is H*W, not W.
    xf = x.reshape(N, C, HW)

    # --- batch tile: multiple of 8 (output sublane constraint) if possible, else full N.
    tn = _pick_tile(N, 8, 8) or N

    # --- channel tile: multiple of 128 (lane-dense output) if possible, else full C.
    max_tc = max(128, block_bytes // (itemsize * tn * min(HW, 512)))
    tc = _pick_tile(C, 128, max_tc) or C

    # --- spatial (reduction) tile: full HW if it fits, else multiple-of-128 chunks.
    if tn * tc * HW * itemsize <= block_bytes:
        thw = HW
    else:
        max_thw = max(128, block_bytes // (itemsize * tn * tc))
        thw = _pick_tile(HW, 128, max_thw) or HW
        # If HW cannot be chunked evenly into 128-multiples, shrink the channel
        # tile instead so the block stays within the VMEM budget (v7x: 64 MiB).
        if thw == HW and tn * tc * HW * itemsize > block_bytes and tc > 128:
            max_tc2 = max(128, block_bytes // (itemsize * tn * HW))
            tc2 = _pick_tile(C, 128, max_tc2)
            if tc2 is not None:
                tc = tc2

    grid = (N // tn, C // tc, HW // thw)
    kernel = functools.partial(_gap2d_kernel, inv_hw=1.0 / float(HW))

    return pl.pallas_call(
        kernel,
        out_shape=jax.ShapeDtypeStruct((N, C), x.dtype),
        grid=grid,
        in_specs=[
            pl.BlockSpec((tn, tc, thw), lambda n, c, k: (n, c, k)),
        ],
        # Output block index is independent of k -> resident accumulator output.
        out_specs=pl.BlockSpec((tn, tc), lambda n, c, k: (n, c)),
        scratch_shapes=[pltpu.VMEM((tn, tc), jnp.float32)],
        compiler_params=pltpu.CompilerParams(
            dimension_semantics=("parallel", "parallel", "arbitrary")
        ),
    )(xf)


if __name__ == "__main__":
    # Primary check: small shape consistent with the module spec.
    key = jax.random.PRNGKey(0)
    x = jax.random.normal(key, (2, 4, 16, 16), dtype=jnp.float32)

    out = jax.block_until_ready(global_average_pooling_2d(x))
    ref = jnp.mean(x, axis=(2, 3))
    assert out.shape == (2, 4), out.shape
    assert jnp.allclose(out, ref, atol=1e-5, rtol=1e-5), "mismatch vs reference (f32)"

    # Secondary check: exercise the lane-dense channel-tiled path (C % 128 == 0, bf16).
    x2 = jax.random.normal(jax.random.PRNGKey(1), (2, 256, 16, 16), dtype=jnp.bfloat16)
    out2 = jax.block_until_ready(global_average_pooling_2d(x2))
    ref2 = jnp.mean(x2.astype(jnp.float32), axis=(2, 3)).astype(jnp.bfloat16)
    assert out2.shape == (2, 256), out2.shape
    assert jnp.allclose(
        out2.astype(jnp.float32), ref2.astype(jnp.float32), atol=2e-2, rtol=2e-2
    ), "mismatch vs reference (bf16)"

    print("KERNEL_OK")
</pallas_src>

<mosaic_0001>
module attributes {stable_mosaic.version = 11 : i64} {
  func.func @_gap2d_kernel(%arg0: i32, %arg1: i32, %arg2: i32, %arg3: memref<2x4x256xf32, #tpu.memory_space<vmem>>, %arg4: memref<2x4xf32, #tpu.memory_space<vmem>>, %arg5: memref<2x4xf32, #tpu.memory_space<vmem>>) attributes {dimension_semantics = [#tpu.dimension_semantics<parallel>, #tpu.dimension_semantics<parallel>, #tpu.dimension_semantics<arbitrary>], iteration_bounds = array<i64: 1, 1, 1>, scalar_prefetch = 0 : i64, scratch_operands = 1 : i64, tpu.core_type = #tpu.core_type<tc>, window_params = [{transform_indices = @transform_0, window_bounds = array<i64: 2, 4, 256>}, {transform_indices = @transform_1, window_bounds = array<i64: 2, 4>}]} {
    %c0_i32 = arith.constant 0 : i32
    %0 = arith.cmpi eq, %arg2, %c0_i32 : i32
    %1 = arith.extui %0 : i1 to i32
    %c0_i32_0 = arith.constant 0 : i32
    %2 = arith.cmpi ne, %1, %c0_i32_0 : i32
    scf.if %2 {
      %cst_9 = arith.constant 0.000000e+00 : f32
      %11 = vector.broadcast %cst_9 : f32 to vector<2x4xf32>
      %c0_10 = arith.constant 0 : index
      %c0_11 = arith.constant 0 : index
      %12 = vector.load %arg5[%c0_10, %c0_11] : memref<2x4xf32, #tpu.memory_space<vmem>>, vector<2x4xf32>
      tpu.vector_store %arg5[%c0_10, %c0_11], %11 {strides = array<i32>} : memref<2x4xf32, #tpu.memory_space<vmem>>, vector<2x4xf32>,
    } else {
    }
    %c0 = arith.constant 0 : index
    %c0_1 = arith.constant 0 : index
    %c0_2 = arith.constant 0 : index
    %3 = vector.load %arg3[%c0, %c0_1, %c0_2] : memref<2x4x256xf32, #tpu.memory_space<vmem>>, vector<2x4x256xf32>
    %c0_3 = arith.constant 0 : index
    %c0_4 = arith.constant 0 : index
    %4 = vector.load %arg5[%c0_3, %c0_4] : memref<2x4xf32, #tpu.memory_space<vmem>>, vector<2x4xf32>
    %cst = arith.constant dense<0.000000e+00> : vector<2x4xf32>
    %5 = vector.multi_reduction <add>, %3, %cst [2] : vector<2x4x256xf32> to vector<2x4xf32>
    %6 = arith.addf %4, %5 : vector<2x4xf32>
    %c0_5 = arith.constant 0 : index
    %c0_6 = arith.constant 0 : index
    %7 = vector.load %arg5[%c0_5, %c0_6] : memref<2x4xf32, #tpu.memory_space<vmem>>, vector<2x4xf32>
    tpu.vector_store %arg5[%c0_5, %c0_6], %6 {strides = array<i32>} : memref<2x4xf32, #tpu.memory_space<vmem>>, vector<2x4xf32>,
    %c0_i32_7 = arith.constant 0 : i32
    %8 = arith.cmpi eq, %arg2, %c0_i32_7 : i32
    %9 = arith.extui %8 : i1 to i32
    %c0_i32_8 = arith.constant 0 : i32
    %10 = arith.cmpi ne, %9, %c0_i32_8 : i32
    scf.if %10 {
      %c0_9 = arith.constant 0 : index
      %c0_10 = arith.constant 0 : index
      %11 = vector.load %arg5[%c0_9, %c0_10] : memref<2x4xf32, #tpu.memory_space<vmem>>, vector<2x4xf32>
      %cst_11 = arith.constant 3.906250e-03 : f32
      %12 = vector.broadcast %cst_11 : f32 to vector<2x4xf32>
      %13 = arith.mulf %11, %12 : vector<2x4xf32>
      %c0_12 = arith.constant 0 : index
      %c0_13 = arith.constant 0 : index
      %14 = vector.load %arg4[%c0_12, %c0_13] : memref<2x4xf32, #tpu.memory_space<vmem>>, vector<2x4xf32>
      tpu.vector_store %arg4[%c0_12, %c0_13], %13 {strides = array<i32>} : memref<2x4xf32, #tpu.memory_space<vmem>>, vector<2x4xf32>,
    } else {
    }
    return
  }
  func.func @transform_0(%arg0: i32, %arg1: i32, %arg2: i32) -> (i32, i32, i32) {
    %c0_i32 = arith.constant 0 : i32
    return %arg0, %arg1, %arg2 : i32, i32, i32
  }
  func.func @transform_1(%arg0: i32, %arg1: i32, %arg2: i32) -> (i32, i32) {
    %c0_i32 = arith.constant 0 : i32
    return %arg0, %arg1 : i32, i32
  }
}

</mosaic_0001>

<bundles_post_ra>
// kernel: tpu_custom_call.1
= control target key start
LH: loop header
LB: loop body
LE: loop exit
PB: predicated region body
PF: predicated region fallthrough
CT: control target
= control target key end

     0   :  { %6 = vsyncpa [#allocation4], 0  ;;  %s174_s0 = inlined_call_operand.hbm [shape: f32[2,4,256], index: 0, kind: input, shape index: {}]   ;;  %s175_s1 = inlined_call_operand.hbm [shape: f32[2,4], index: 1, kind: output, shape index: {}]  }
   0x1   :  { %7 = vsyncpa [#allocation5], 0  ;;  %s12_s8 = sshll.u32 %s174_s0, 4  ;;  %s150_s9 = smov [#allocation3]   ;;  %s13_s8 = int_to_ptr.hbm [resolvable:$true] %s12_s8 }
   0x2   :  { %s14_s10 = sshll.u32 %s150_s9, 4  ;;  %s151_s11 = smov 128   ;;  %s15_s10 = int_to_ptr.vmem [resolvable:$true] %s14_s10 }
   0x3   :  { %s152_s12 = smov 8  }
   0x4   :  { %20 = dma.hbm_to_vmem [thread:$0]  %s13_s8, 256, %s15_s10, [#allocation4], %s151_s11, %s151_s11, %s152_s12  }
   0x5   :  { %146 = dma.done.wait [#allocation4], 256  }
   0x6   :  { %147 = vsyncadd [#allocation4], 4294967040  ;;  %v31_v0 = vld [vmem:[#allocation3] sm:$0xff]  ;;  %v32_v1 = vld [vmem:[#allocation3 + $0x8] sm:$0xff]  ;;  %vm47_vm0 = vcmask 1043456   ;;  %vm29_vm1 = vcmask 25600   ;;  %v60_v14 = vlaneseq }
   0x7   :  { %36 = vst [vmem:[#allocation1] ss:$2 sm:$0xff] %v31_v0  ;;  %v153_v12 = vmov 0.0   ;;  %vm64_vm2 = vcmask 1041409   ;;  %s154_s0 = smov [#allocation6]   ;;  %s83_s16 = sshll.u32 %s175_s1, 4  ;;  %s84_s16 = int_to_ptr.hbm [resolvable:$true] %s83_s16 }
   0x8   :  { %40 = vst [vmem:[#allocation1 + $0x10] ss:$2 sm:$0xff] %v32_v1  ;;  %v61_v15 = vand.u32 127, %v60_v14  ;;  %s81_s13 = sshll.u32 %s154_s0, 4  ;;  %s82_s13 = int_to_ptr.vmem [resolvable:$true] %s81_s13 }
   0x9   :  { %30 = vst.msk [vmem:[#allocation2] sm:$0x3] %vm29_vm1, %v153_v12 }
   0xe   :  { %v37_v2 = vld.sshfl [vmem:[#allocation1] sm:$0xff pattern:$0x75316420]  ;;  %v38_v3 = vld.sshfl [vmem:[#allocation1 + $0x8] sm:$0xff pattern:$0x75316420] }
   0xf   :  { %v48_v4 = vsel %vm47_vm0, %v37_v2, 0.0  ;;  %v49_v5 = vsel %vm47_vm0, %v38_v3, 0.0  ;;  %v41_v7 = vld.sshfl [vmem:[#allocation1 + $0x10] sm:$0xff pattern:$0x75316420] }
  0x10   :  { %v50_v6 = vadd.f32 %v49_v5, %v48_v4  ;;  %v42_v8 = vld.sshfl [vmem:[#allocation1 + $0x18] sm:$0xff pattern:$0x75316420]  ;;  %v53_v9 = vsel %vm47_vm0, %v41_v7, 0.0  ;;  %v33_v19 = vld [vmem:[#allocation2] sm:$0x3] }
  0x11   :  { %v54_v10 = vsel %vm47_vm0, %v42_v8, 0.0 }
  0x12   :  { %51 = vadd.xlane.f32.xlu0 %v50_v6  ;;  %v55_v11 = vadd.f32 %v54_v10, %v53_v9 }
  0x1a   :  { %56 = vadd.xlane.f32.xlu0 %v55_v11 }
  0x85   :  { %v52_v13 = vpop.xlane.xlu0 %51 }
  0x86   :  { %v62_v17 = vperm.slane %v52_v13, %v61_v15 }
  0x8d   :  { %v57_v16 = vpop.xlane.xlu0 %56 }
  0x8e   :  { %v63_v18 = vperm.slane %v57_v16, %v61_v15 }
  0x90   :  { %v65_v20 = vsel %vm64_vm2, %v63_v18, %v62_v17 }
  0x91   :  { %v67_v21 = vadd.f32 %v65_v20, %v33_v19 }
  0x93   :  { %69 = vst.msk [vmem:[#allocation2] sm:$0x3] %vm29_vm1, %v67_v21 }
  0x9a   :  { %v73_v22 = vld [vmem:[#allocation2] sm:$0x3] }
  0x9b   :  { %v74_v23 = vmul.f32 0.00390625, %v73_v22 }
  0x9d   :  { %75 = vst.msk [vmem:[#allocation6] sm:$0x3] %vm29_vm1, %v74_v23 }
  0x9e   :  { %86 = dma.vmem_to_hbm [thread:$0]  %s82_s13, 32, %s84_s16, [#allocation5]  }
  0x9f   :  { %148 = dma.done.wait [#allocation5], 32  }
  0xa0   :  { %149 = vsyncadd [#allocation5], 4294967264 }
  0xa1   :  { %91 = vsyncpa [#allocation4], 1 }
  0xa2   :  { %92 = vsyncpa [#allocation5], 1 }

</bundles_post_ra>
